<compile_context>
chip_gen: v7x
topology: tpu7x:2x2x1
jax: 0.10.0
libtpu: 0.0.40
codegen_flags: <defaults>
</compile_context>

<pallas_src>
import jax
import jax.numpy as jnp
from jax.experimental import pallas as pl
from jax.experimental.pallas import tpu as pltpu

_HIGHEST = jax.lax.Precision.HIGHEST


def _round_up(x, m):
    return ((x + m - 1) // m) * m


# --------------------------------------------------------------------------
# Pallas kernel 1: fused q/k/v 1x1 convolution
#   w: (3*Cout, Cin), x: (1, Cin, TP) -> o: (1, 3*Cout, TP)
#   channels on sublanes, pixels on lanes -> lane-dense, transpose-free
# --------------------------------------------------------------------------
def _qkv_conv_kernel(w_ref, x_ref, o_ref):
    o_ref[0] = jnp.dot(
        w_ref[...], x_ref[0],
        precision=_HIGHEST, preferred_element_type=jnp.float32,
    ).astype(o_ref.dtype)


def fused_qkv_conv_pallas(x_ncp, w_qkv, *, tile_pixels=None):
    """x_ncp: (B, Cin, P) NCHW-flat padded input; w_qkv: (3*Cout, Cin)."""
    B, Cin, P = x_ncp.shape
    C3 = w_qkv.shape[0]

    if tile_pixels is None:
        # double-buffered x + out blocks, f32, ~16 MiB budget
        bytes_per_pixel = 2 * 4 * (_round_up(Cin, 8) + _round_up(C3, 8))
        tile_pixels = max(
            256, min(8192, ((16 * 1024 * 1024) // bytes_per_pixel) // 128 * 128)
        )
    TP = P if P <= tile_pixels else tile_pixels

    grid = (B, pl.cdiv(P, TP))
    return pl.pallas_call(
        _qkv_conv_kernel,
        out_shape=jax.ShapeDtypeStruct((B, C3, P), x_ncp.dtype),
        grid=grid,
        in_specs=[
            pl.BlockSpec((C3, Cin), lambda b, j: (0, 0)),
            pl.BlockSpec((1, Cin, TP), lambda b, j: (b, 0, j)),
        ],
        out_specs=pl.BlockSpec((1, C3, TP), lambda b, j: (b, 0, j)),
        compiler_params=pltpu.CompilerParams(
            dimension_semantics=("parallel", "parallel"),
            vmem_limit_bytes=48 * 1024 * 1024,
        ),
    )(w_qkv, x_ncp)


# --------------------------------------------------------------------------
# Pallas kernel 2: per-pixel attention over the kk = k*k neighborhood
#   q: (Nb, d), k/v: (Nb, kk*d)  ->  out: (Nb, d)
#   Neighbor-axis broadcasts / reductions use constant 0/1 matrices on the
#   (otherwise idle) MXU so everything stays 2-D and lane-flat.
# --------------------------------------------------------------------------
def _attn_kernel(q_ref, k_ref, v_ref, dm_ref, dmt_ref, e_ref, et_ref, o_ref):
    f32 = jnp.float32
    q = q_ref[...].astype(f32)          # (Nb, d)
    k = k_ref[...].astype(f32)          # (Nb, kk*d)
    v = v_ref[...].astype(f32)          # (Nb, kk*d)
    dm = dm_ref[...]                    # (d, kk*d)   dm[a, m*d+b]  = (a == b)
    dmt = dmt_ref[...]                  # (kk*d, d)
    e = e_ref[...]                      # (kk, kk*d)  e[m, m'*d+b]  = (m == m')
    et = et_ref[...]                    # (kk*d, kk)

    # broadcast q across the kk neighbor slots along lanes
    q_t = jnp.dot(q, dm, precision=_HIGHEST, preferred_element_type=f32)   # (Nb, kk*d)
    # logits[n, m] = sum_b q[n, b] * k[n, m*d + b]
    logits = jnp.dot(q_t * k, et, precision=_HIGHEST,
                     preferred_element_type=f32)                           # (Nb, kk)

    mx = jnp.max(logits, axis=-1, keepdims=True)
    ex = jnp.exp(logits - mx)
    s = jnp.sum(ex, axis=-1, keepdims=True)
    p = ex / s                                                              # exact softmax

    # out[n, b] = sum_m p[n, m] * v[n, m*d + b]
    p_exp = jnp.dot(p, e, precision=_HIGHEST, preferred_element_type=f32)   # (Nb, kk*d)
    out = jnp.dot(p_exp * v, dmt, precision=_HIGHEST,
                  preferred_element_type=f32)                               # (Nb, d)
    o_ref[...] = out.astype(o_ref.dtype)


def _pick_attn_block_rows(n_rows, kkd, d, max_rows=8192, budget_bytes=24 * 1024 * 1024):
    lanes = lambda n: _round_up(n, 128)
    # double-buffered k, v, q, out blocks (f32, lanes padded to 128)
    bytes_per_row = 2 * 4 * (2 * lanes(kkd) + 2 * lanes(d))
    rows = min(max_rows, budget_bytes // bytes_per_row)
    # keep >= 2 grid steps so the "parallel" axis can split across 2 TCs (v7x)
    rows = min(rows, _round_up(pl.cdiv(n_rows, 2), 8))
    rows = max(8, (rows // 8) * 8)
    return int(rows)


def attention_pallas(qf, kf, vf, *, kk, d, block_rows=None):
    """qf: (N, d), kf/vf: (N, kk*d) -> (N, d)."""
    N, d_in = qf.shape
    kkd = kf.shape[1]
    assert d_in == d and kkd == kk * d

    Nb = block_rows if block_rows is not None else _pick_attn_block_rows(N, kkd, d)

    f32 = jnp.float32
    j = jnp.arange(kkd)
    e = (j[None, :] // d == jnp.arange(kk)[:, None]).astype(f32)    # (kk, kkd)
    dm = (j[None, :] % d == jnp.arange(d)[:, None]).astype(f32)     # (d, kkd)

    grid = (pl.cdiv(N, Nb),)
    return pl.pallas_call(
        _attn_kernel,
        out_shape=jax.ShapeDtypeStruct((N, d), qf.dtype),
        grid=grid,
        in_specs=[
            pl.BlockSpec((Nb, d), lambda i: (i, 0)),
            pl.BlockSpec((Nb, kkd), lambda i: (i, 0)),
            pl.BlockSpec((Nb, kkd), lambda i: (i, 0)),
            pl.BlockSpec((d, kkd), lambda i: (0, 0)),
            pl.BlockSpec((kkd, d), lambda i: (0, 0)),
            pl.BlockSpec((kk, kkd), lambda i: (0, 0)),
            pl.BlockSpec((kkd, kk), lambda i: (0, 0)),
        ],
        out_specs=pl.BlockSpec((Nb, d), lambda i: (i, 0)),
        compiler_params=pltpu.CompilerParams(
            dimension_semantics=("parallel",),
            vmem_limit_bytes=48 * 1024 * 1024,
        ),
    )(qf, kf, vf, dm, dm.T, e, e.T)


# --------------------------------------------------------------------------
# Glue (pure indexing / reshapes, mirrors the torch forward exactly)
# --------------------------------------------------------------------------
def _unfold(t, k, stride, H_out, W_out):
    # torch: t.unfold(2, k, s).unfold(3, k, s) -> (B, C, H_out, W_out, k_h, k_w)
    rows = []
    for a in range(k):
        cols = []
        for b in range(k):
            cols.append(
                t[:, :, a : a + H_out * stride : stride, b : b + W_out * stride : stride]
            )
        rows.append(jnp.stack(cols, axis=-1))
    return jnp.stack(rows, axis=-2)


def attention_conv_forward(x, params, *, kernel_size, stride, padding, groups):
    """Pallas implementation of AttentionConv.forward (input x is NCHW)."""
    B, Cin, H, W = x.shape
    Cout = params["w_q"].shape[0]
    k, kk, d = kernel_size, kernel_size * kernel_size, Cout // groups

    xp = jnp.pad(x, ((0, 0), (0, 0), (padding, padding), (padding, padding)))
    Hp, Wp = H + 2 * padding, W + 2 * padding
    H_out = (Hp - k) // stride + 1
    W_out = (Wp - k) // stride + 1
    # the original module's .view() implicitly requires this
    assert H_out == H and W_out == W

    # ---- fused q/k/v 1x1 conv: one Pallas matmul on the padded input ----
    w_qkv = jnp.concatenate(
        [params["w_q"].reshape(Cout, Cin),
         params["w_k"].reshape(Cout, Cin),
         params["w_v"].reshape(Cout, Cin)], axis=0)                   # (3*Cout, Cin)
    qkv = fused_qkv_conv_pallas(xp.reshape(B, Cin, Hp * Wp), w_qkv)   # (B, 3*Cout, Hp*Wp)
    qkv = qkv.reshape(B, 3 * Cout, Hp, Wp)

    q_out = qkv[:, :Cout, padding:padding + H, padding:padding + W]   # == query_conv(x)
    k_out = qkv[:, Cout:2 * Cout]                                     # on padded image
    v_out = qkv[:, 2 * Cout:]

    # ---- single tiny rel table -> one fused add, no big concatenate copy ----
    half = Cout // 2
    rel_full = jnp.concatenate(
        [jnp.broadcast_to(params["rel_h"], (half, 1, 1, k, k)),
         jnp.broadcast_to(params["rel_w"], (half, 1, 1, k, k))], axis=0)  # (Cout,1,1,k,k)

    # ---- unfold (XLA glue) ----
    # TODO(synk): the raw-memory .view() reinterpretation scrambles channel/
    # spatial/neighbor indices for d>1, so the kk-neighborhood gather stays as
    # exact XLA indexing instead of an in-kernel halo block read for now.
    k_unf = _unfold(k_out, k, stride, H, W)        # (B, Cout, H, W, k, k)
    v_unf = _unfold(v_out, k, stride, H, W)
    k_cat = k_unf + rel_full[None]

    # C-order reshapes == torch .view() on contiguous tensors (exact semantics)
    N = B * groups * H * W
    qf = q_out.reshape(N, d)
    kf = k_cat.reshape(N, kk * d)
    vf = v_unf.reshape(N, kk * d)

    out_flat = attention_pallas(qf, kf, vf, kk=kk, d=d)               # (N, d)
    return out_flat.reshape(B, Cout, H, W)


def attention_conv_reference(x, params, *, kernel_size, stride, padding, groups):
    """Pure-JAX reference mirroring the PyTorch forward (for validation)."""
    B, Cin, H, W = x.shape
    Cout = params["w_q"].shape[0]
    k, kk, d = kernel_size, kernel_size * kernel_size, Cout // groups

    xp = jnp.pad(x, ((0, 0), (0, 0), (padding, padding), (padding, padding)))

    def conv1x1(inp, w):
        return jnp.einsum("oc,bchw->bohw", w.reshape(Cout, Cin), inp,
                          precision=_HIGHEST)

    q_out = conv1x1(x, params["w_q"])
    k_out = conv1x1(xp, params["w_k"])
    v_out = conv1x1(xp, params["w_v"])

    k_unf = _unfold(k_out, k, stride, H, W)
    v_unf = _unfold(v_out, k, stride, H, W)
    half = Cout // 2
    k_cat = jnp.concatenate(
        [k_unf[:, :half] + params["rel_h"][None],
         k_unf[:, half:] + params["rel_w"][None]], axis=1)

    kf = k_cat.reshape(B, groups, H, W, kk, d).reshape(-1, kk, d)
    vf = v_unf.reshape(B, groups, H, W, kk, d).reshape(-1, kk, d)
    qf = q_out.reshape(B, groups, H, W, 1, d).reshape(-1, d)

    logits = jnp.einsum("nd,nmd->nm", qf, kf, precision=_HIGHEST)
    p = jax.nn.softmax(logits, axis=-1)
    of = jnp.einsum("nm,nmd->nd", p, vf, precision=_HIGHEST)
    return of.reshape(B, -1, H, W)


# --------------------------------------------------------------------------
if __name__ == "__main__":
    B, Cin, H, W = 2, 4, 16, 16
    Cout, kernel_size, stride, padding, groups = 16, 3, 1, 1, 2

    key = jax.random.PRNGKey(0)
    k1, k2, k3, k4, k5, k6 = jax.random.split(key, 6)

    # kaiming_normal_(mode='fan_out', nonlinearity='relu'): std = sqrt(2 / fan_out)
    fan_out = Cout * 1 * 1
    std = (2.0 / fan_out) ** 0.5
    params = {
        "w_q": jax.random.normal(k1, (Cout, Cin, 1, 1), jnp.float32) * std,
        "w_k": jax.random.normal(k2, (Cout, Cin, 1, 1), jnp.float32) * std,
        "w_v": jax.random.normal(k3, (Cout, Cin, 1, 1), jnp.float32) * std,
        "rel_h": jax.random.normal(k4, (Cout // 2, 1, 1, kernel_size, 1), jnp.float32),
        "rel_w": jax.random.normal(k5, (Cout // 2, 1, 1, 1, kernel_size), jnp.float32),
    }
    x = jax.random.normal(k6, (B, Cin, H, W), jnp.float32)

    out = attention_conv_forward(
        x, params, kernel_size=kernel_size, stride=stride, padding=padding, groups=groups
    )
    out = jax.block_until_ready(out)

    ref = attention_conv_reference(
        x, params, kernel_size=kernel_size, stride=stride, padding=padding, groups=groups
    )
    assert out.shape == (B, Cout, H, W)
    err = float(jnp.max(jnp.abs(out - ref)))
    assert jnp.allclose(out, ref, atol=2e-3, rtol=2e-3), err
    print("KERNEL_OK")
</pallas_src>

<mosaic_0001>
module attributes {stable_mosaic.version = 11 : i64} {
  func.func @_qkv_conv_kernel(%arg0: i32, %arg1: i32, %arg2: memref<48x4xf32, #tpu.memory_space<vmem>>, %arg3: memref<1x4x324xf32, #tpu.memory_space<vmem>>, %arg4: memref<1x48x324xf32, #tpu.memory_space<vmem>>) attributes {dimension_semantics = [#tpu.dimension_semantics<parallel>, #tpu.dimension_semantics<parallel>], iteration_bounds = array<i64: 2, 1>, scalar_prefetch = 0 : i64, scratch_operands = 0 : i64, tpu.core_type = #tpu.core_type<tc>, window_params = [{pipeline_mode = #tpu.pipeline_mode<synchronous>, transform_indices = @transform_0, window_bounds = array<i64: 48, 4>}, {transform_indices = @transform_1, window_bounds = array<i64: 1, 4, 324>}, {transform_indices = @transform_2, window_bounds = array<i64: 1, 48, 324>}]} {
    %c0 = arith.constant 0 : index
    %c0_0 = arith.constant 0 : index
    %0 = vector.load %arg2[%c0, %c0_0] : memref<48x4xf32, #tpu.memory_space<vmem>>, vector<48x4xf32>
    %c0_1 = arith.constant 0 : index
    %c0_2 = arith.constant 0 : index
    %c0_3 = arith.constant 0 : index
    %1 = vector.load %arg3[%c0_1, %c0_2, %c0_3] : memref<1x4x324xf32, #tpu.memory_space<vmem>>, vector<1x4x324xf32>
    %2 = vector.shape_cast %1 : vector<1x4x324xf32> to vector<4x324xf32>
    %cst = arith.constant dense<0.000000e+00> : vector<48x324xf32>
    %3 = tpu.matmul %0, %2, %cst {dimension_numbers = #tpu.dot_dimension_numbers<[1], [0], [0], [1], [0, 0, 1, 1], [], []>, precision = #tpu.contract_precision<fp32>} : vector<48x4xf32>, vector<4x324xf32>, vector<48x324xf32> -> vector<48x324xf32>
    %c0_4 = arith.constant 0 : index
    %c0_5 = arith.constant 0 : index
    %c0_6 = arith.constant 0 : index
    %4 = vector.load %arg4[%c0_4, %c0_5, %c0_6] : memref<1x48x324xf32, #tpu.memory_space<vmem>>, vector<1x48x324xf32>
    %5 = vector.shape_cast %4 : vector<1x48x324xf32> to vector<48x324xf32>
    %6 = vector.shape_cast %3 : vector<48x324xf32> to vector<1x48x324xf32>
    tpu.vector_store %arg4[%c0_4, %c0_5, %c0_6], %6 {strides = array<i32>} : memref<1x48x324xf32, #tpu.memory_space<vmem>>, vector<1x48x324xf32>,
    return
  }
  func.func @transform_0(%arg0: i32, %arg1: i32) -> (i32, i32) {
    %c0_i32 = arith.constant 0 : i32
    %c0_i32_0 = arith.constant 0 : i32
    %c0_i32_1 = arith.constant 0 : i32
    return %c0_i32, %c0_i32_0 : i32, i32
  }
  func.func @transform_1(%arg0: i32, %arg1: i32) -> (i32, i32, i32) {
    %c0_i32 = arith.constant 0 : i32
    %c0_i32_0 = arith.constant 0 : i32
    return %arg0, %c0_i32, %arg1 : i32, i32, i32
  }
  func.func @transform_2(%arg0: i32, %arg1: i32) -> (i32, i32, i32) {
    %c0_i32 = arith.constant 0 : i32
    %c0_i32_0 = arith.constant 0 : i32
    return %arg0, %c0_i32, %arg1 : i32, i32, i32
  }
}

</mosaic_0001>

<bundles_post_ra>
// kernel: tpu_custom_call.1
= control target key start
LH: loop header
LB: loop body
LE: loop exit
PB: predicated region body
PF: predicated region fallthrough
CT: control target
= control target key end

     0   :  { %7 = vsyncpa [#allocation3], 0  ;;  %s2437_s0 = inlined_call_operand.vmem [shape: f32[48,4], index: 0, kind: input, shape index: {}]   ;;  %s2438_s1 = inlined_call_operand.vmem [shape: f32[2,4,324], index: 1, kind: input, shape index: {}]   ;;  %s2439_s2 = inlined_call_operand.hbm [shape: f32[2,48,324], index: 2, kind: output, shape index: {}]  }
   0x1   :  { %9 = vsyncpa [#allocation3 + $0x1], 0  ;;  %s2065_s9 = smov 0   ;;  %s2067_s10 = smov 0  }
   0x2   :  { %s2069_s11 = smov 0   ;;  %s2071_s12 = smov 0  }
   0x3   :  { %s2073_s13 = smov 0   ;;  %s2075_s14 = smov 0  }
   0x4 LB: > { %s1695_s15 = sadd.s32 4294967295, %s2044_s14   ;;  %s1696_s16 = sadd.s32 4294967294, %s2044_s14   ;;  %s2044_s14 = sphi %s2075_s14, %s15_s14   ;;  %s2040_s13 = sphi %s2073_s13, %s2446_s13   ;;  %s2036_s12 = sphi %s2071_s12, %s2445_s12   ;;  %s2032_s11 = sphi %s2069_s11, %s2444_s11   ;;  %s2028_s10 = sphi %s2067_s10, %s2443_s10   ;;  %s2024_s9 = sphi %s2065_s9, %s2442_s9  }
   0x5   : > { %s27_s17 = sadd.s32 1, %s2040_s13  ;;  %s85_s18 = sadd.s32 1, %s2032_s11 }
   0x6   : > { %p29_p0 = scmp.ge.s32.totalorder %s27_s17, 2  ;;  %p95_p1 = scmp.ne.s32.totalorder %s2032_s11, %s2028_s10 }
   0x7   : > { %p96_p2 = scmp.eq.s32.totalorder %s1695_s15, 1  ;;  %p101_p3 = scmp.ne.s32.totalorder %s2028_s10, %s2024_s9 }
   0x8   : > { %s2448_s17 = smov (%p29_p0, %s27_s17), 0  ;;  %p102_p5 = scmp.eq.s32.totalorder %s1696_s16, 1 }
   0x9   : > { %p2105_p4 = por %p96_p2, %p95_p1  ;;  %s80_s20 = ssub.s32 %s2040_s13, %s2448_s17 }
   0xa   : > { %p1699_p6 = scmp.ge.s32.totalorder %s2044_s14, 1  ;;  %p83_p7 = scmp.eq.s32.totalorder %s80_s20, 0 }
   0xb   : > { %p2112_p8 = por %p102_p5, %p101_p3  ;;  %p136_p9 = scmp.lt.s32.totalorder %s2044_s14, 3 }
   0xc   : > { %s2118_s22 = scalar_select %p83_p7, %s2032_s11, %s85_s18  }
   0xd   : > { %p137_p10 = pnand %p1699_p6, %p136_p9 }
   0xe   : > { %p163_p11 = scmp.lt.s32.totalorder (!%p137_p10), %s2036_s12, 1  ;;  %v173_v0 = vld [vmem:[%s2437_s0] sm:$0xff] (!%p137_p10)  ;;  %vm184_vm0 = vcmask (!%p137_p10), 31744   ;;  %v174_v1 = vld [vmem:[%s2437_s0 + $0x8] sm:$0xff] (!%p137_p10)  ;;  %v2046_v2 = vmov (!%p137_p10), 0.0   ;;  %v175_v5 = vld [vmem:[%s2437_s0 + $0x10] sm:$0xff] (!%p137_p10) }
   0xf   : > { %140 = sbr.rel (%p137_p10) target bundleno = 377 (0x179), region = 28  ;;  %276 = vmatprep.mubr.f32.mxu1 (!%p137_p10), %v2046_v2  ;;  %v186_v3 = vsel (!%p137_p10), %vm184_vm0, %v173_v0, 0  ;;  %v189_v4 = vsel (!%p137_p10), %vm184_vm0, %v174_v1, 0  ;;  %417 = vmatprep.mubr.f32.mxu0 (!%p137_p10), %v2046_v2  ;;  %v176_v6 = vld [vmem:[%s2437_s0 + $0x18] sm:$0xff] (!%p137_p10)  ;;  %v192_v9 = vsel (!%p137_p10), %vm184_vm0, %v175_v5, 0  ;;  %v177_v14 = vld [vmem:[%s2437_s0 + $0x20] sm:$0xff] (!%p137_p10) }
  0x10   : > { %v2138_v7 = vand.u32 (!%p137_p10), 4294901760, %v186_v3  ;;  %v2140_v8 = vand.u32 (!%p137_p10), 4294901760, %v189_v4  ;;  %v2143_v10 = vand.u32 (!%p137_p10), 4294901760, %v192_v9  ;;  %v195_v11 = vsel (!%p137_p10), %vm184_vm0, %v176_v6, 0  ;;  %v178_v18 = vld [vmem:[%s2437_s0 + $0x28] sm:$0xff] (!%p137_p10)  ;;  %s159_s20 = sand.u32 (!%p137_p10), 1, %s2028_s10  }
  0x11   : > { %vm203_vm1 = vcmask (!%p137_p10), 1043456   ;;  %v2164_v17 = vand.u32 (!%p137_p10), 4294901760, %v195_v11  ;;  %v198_v21 = vsel (!%p137_p10), %vm184_vm0, %v177_v14, 0  ;;  %v201_v26 = vsel (!%p137_p10), %vm184_vm0, %v178_v18, 0  ;;  %s1904_s23 = smul.u32 (!%p137_p10), 144, %s159_s20 }
  0x12   : > { %v2147_v12 = vsub.f32 (!%p137_p10), %v186_v3, %v2138_v7  ;;  %v2150_v13 = vsub.f32 (!%p137_p10), %v189_v4, %v2140_v8  ;;  %v2162_v16 = vsub.f32 (!%p137_p10), %v192_v9, %v2143_v10  ;;  %v2186_v30 = vand.u32 (!%p137_p10), 4294901760, %v198_v21  ;;  %s1906_s25 = smul.u32 (!%p137_p10), 2304, %s2036_s12 }
  0x13   : > { %v2184_v29 = vsub.f32 (!%p137_p10), %v195_v11, %v2164_v17  ;;  %v2207_v39 = vand.u32 (!%p137_p10), 4294901760, %v201_v26  ;;  %vm1583_vm2 = vcmask (!%p137_p10), 556032   ;;  %s2354_s24 = scalar_lea.vmem (!%p137_p10), [#allocation2], %s1904_s23 }
  0x14   : > { %v2159_v15 = vand.u32 (!%p137_p10), 4294901760, %v2147_v12  ;;  %v2170_v20 = vand.u32 (!%p137_p10), 4294901760, %v2150_v13  ;;  %v2181_v28 = vand.u32 (!%p137_p10), 4294901760, %v2162_v16  ;;  %v2205_v38 = vsub.f32 (!%p137_p10), %v198_v21, %v2186_v30  ;;  %s1616_s26 = sshll.u32 (!%p137_p10), %s2354_s24, 4  ;;  %s2383_s29 = scalar_lea.hbm (!%p137_p10), %s2439_s2, %s1906_s25  ;;  %s2385_s26 = int_to_ptr.vmem [resolvable:$true] %s1616_s26 }
  0x15   : > { %v2202_v37 = vand.u32 (!%p137_p10), 4294901760, %v2184_v29  ;;  %v2220_v48 = vsub.f32 (!%p137_p10), %v201_v26, %v2207_v39  ;;  %s1966_s30 = scalar_lea.vmem (!%p137_p10), %s2385_s26, 2304 }
  0x16   : > { %s164_s3 = scalar_select %p163_p11, %s2036_s12, 1  ;;  %v280_v24 = vsub.f32 %v2147_v12, %v2159_v15  ;;  %v291_v33 = vsub.f32 %v2150_v13, %v2170_v20  ;;  %v302_v44 = vsub.f32 %v2162_v16, %v2181_v28  ;;  %v2226_v52 = vand.u32 4294901760, %v2205_v38 }
  0x17   : > { %v313_v51 = vsub.f32 %v2184_v29, %v2202_v37  ;;  %v2235_v56 = vand.u32 4294901760, %v2220_v48  ;;  %s2391_s12 = scalar_lea.sflag [#allocation3], %s159_s20  ;;  %p1967_p12 = scmp.ne.s32.totalorder %s2385_s26, %s1966_s30 }
  0x18   : > { %s1905_s4 = smul.u32 12, %s164_s3  ;;  %v2190_v32 = vand.u32 4294901760, %v280_v24  ;;  %v2210_v41 = vand.u32 4294901760, %v291_v33  ;;  %v303_v50 = vand.u32 4294901760, %v302_v44  ;;  %v324_v55 = vsub.f32 %v2205_v38, %v2226_v52  ;;  %s2047_s3 = smov [#allocation2]  }
  0x19   : > { %v314_v54 = vand.u32 4294901760, %v313_v51  ;;  %v335_v59 = vsub.f32 %v2220_v48, %v2235_v56  ;;  %p1968_p13 = pnand %p1967_p12, %p2105_p4 }
  0x1a   : > { %s170_s15 = scalar_lea.vmem %s2438_s1, %s1905_s4  ;;  %v325_v58 = vand.u32 4294901760, %v324_v55  ;;  %s1970_s4 = sshll.u32 %s2047_s3, 4  ;;  %s1971_s4 = int_to_ptr.vmem [resolvable:$false] %s1970_s4 }
  0x1b   : > { %v179_v19 = vld [vmem:[%s170_s15] sm:$0xff]  ;;  %v180_v40 = vld [vmem:[%s170_s15 + $0x8] sm:$0xf]  ;;  %v336_v61 = vand.u32 4294901760, %v335_v59  ;;  %p1969_p0 = pneg %p1968_p13  ;;  %s1972_s5 = scalar_lea.vmem %s1971_s4, 4608 }
  0x1c   : > { %v183_v22 = vcombine.high %v179_v19, %v179_v19  ;;  %v204_v23 = vsel %vm203_vm1, %v179_v19, 0  ;;  %v208_v46 = vsel %vm203_vm1, %v180_v40, 0  ;;  %p1973_p1 = scmp.lt.s32.totalorder %s2385_s26, %s1971_s4  ;;  %p1974_p2 = scmp.lt.s32.totalorder %s1972_s5, %s1966_s30 }
  0x1d   : > { %v2176_v25 = vand.u32 4294901760, %v204_v23  ;;  %v2229_v53 = vand.u32 4294901760, %v208_v46 }
  0x1e   : > { %v206_v27 = vsel %vm203_vm1, %v183_v22, 0  ;;  %p1975_p3 = por %p1974_p2, %p1973_p1 }
  0x1f   : > { %v2188_v31 = vand.u32 4294901760, %v206_v27  ;;  %v2195_v34 = vsub.f32 %v204_v23, %v2176_v25  ;;  %v1048_v57 = vsub.f32 %v208_v46, %v2229_v53 }
  0x20   : > { %p1976_p5 = pnand %p1975_p3, %p1969_p0 }
  0x21   : > { %211 = vmatprep.subr.mxu1 %v2188_v31  ;;  %v344_v35 = vsub.f32 %v206_v27, %v2188_v31  ;;  %v351_v36 = vand.u32 4294901760, %v2195_v34  ;;  %v2248_v60 = vand.u32 4294901760, %v1048_v57 }
  0x22   : > { %213 = vmatpush1.msra.mxu1 %v2176_v25 }
  0x23   : > { %282 = vmatmul.mubr.f32.vlgmr.msra.gmra.mrb[0].mxu1 %v2190_v32  ;;  %v345_v42 = vand.u32 4294901760, %v344_v35  ;;  %v352_v43 = vsub.f32 %v2195_v34, %v351_v36  ;;  %v1050_v62 = vsub.f32 %v1048_v57, %v2248_v60 }
  0x24   : > { %287 = vmatprep.mubr.f32.mxu1 %v2046_v2 }
  0x25   : > { %v346_v45 = vsub.f32 %v344_v35, %v345_v42  ;;  %v353_v47 = vand.u32 4294901760, %v352_v43  ;;  %v1051_v63 = vand.u32 4294901760, %v1050_v62 }
  0x27   : > { %293 = vmatmul.mubr.f32.gmra.mrb[2].mxu1 %v2210_v41  ;;  %v347_v49 = vand.u32 4294901760, %v346_v45 }
  0x28   : > { %298 = vmatprep.mubr.f32.mxu1 %v2046_v2 }
  0x29   : > { %348 = vmatprep.subr.mxu0 %v347_v49  ;;  %1812 = vmatprep.subr.mxu1 %v347_v49 }
  0x2a   : > { %354 = vmatpush1.msra.mxu0 %v353_v47  ;;  %1813 = vmatpush1.msra.mxu1 %v353_v47 }
  0x2b   : > { %304 = vmatmul.mubr.f32.gmra.mrb[4].mxu1 %v303_v50  ;;  %419 = vmatmul.mubr.f32.vlgmr.msra.gmra.mrb[0].mxu0 %v2138_v7 }
  0x2c   : > { %462 = vmatprep.subr.mxu0 %v344_v35  ;;  %309 = vmatprep.mubr.f32.mxu1 %v2046_v2 }
  0x2d   : > { %465 = vmatpush1.msra.mxu0 %v2195_v34  ;;  %424 = vmatprep.mubr.f32.mxu0 %v2046_v2 }
  0x2e   : > { %578 = vmatprep.subr.mxu0 %v2188_v31  ;;  %1746 = vmatprep.subr.mxu1 %v2229_v53 }
  0x2f   : > { %315 = vmatmul.mubr.f32.gmra.mrb[6].mxu1 %v314_v54  ;;  %426 = vmatmul.mubr.f32.gmra.mrb[2].mxu0 %v2140_v8 }
  0x30   : > { %320 = vmatprep.mubr.f32.mxu1 %v2046_v2  ;;  %431 = vmatprep.mubr.f32.mxu0 %v2046_v2 }
  0x33   : > { %326 = vmatmul.mubr.f32.gmra.mrb[8].mxu1 %v325_v58  ;;  %433 = vmatmul.mubr.f32.gmra.mrb[4].mxu0 %v2143_v10 }
  0x34   : > { %331 = vmatprep.mubr.f32.mxu1 %v2046_v2  ;;  %528 = vmatprep.mubr.f32.mxu0 %v2046_v2 }
  0x37   : > { %337 = vmatmul.mubr.f32.gmra.mrb[10].mxu1 %v336_v61  ;;  %531 = vmatmul.mubr.f32.vlgmr.msra.gmra.mrb[0].mxu0 %v2147_v12 }
  0x38   : > { %580 = vmatpush1.msra.mxu0 %v2176_v25  ;;  %438 = vmatprep.mubr.f32.mxu1 %v2046_v2 }
  0x39   : > { %536 = vmatprep.mubr.f32.mxu0 %v2046_v2  ;;  %701 = vmatprep.subr.mxu0 %v345_v42 }
  0x3b   : > { %440 = vmatmul.mubr.f32.vlgmr.msra.gmra.mrb[6].mxu1 %v2164_v17  ;;  %539 = vmatmul.mubr.f32.gmra.mrb[2].mxu0 %v2150_v13 }
  0x3c   : > { %445 = vmatprep.mubr.f32.mxu1 %v2046_v2  ;;  %544 = vmatprep.mubr.f32.mxu0 %v2046_v2 }
  0x3d   : > { %1747 = vmatpush3.msra.mxu1 %v2229_v53 }
  0x3e   : > { %1757 = vmatprep.subr.mxu1 %v1051_v63 }
  0x3f   : > { %447 = vmatmul.mubr.f32.gmra.mrb[8].mxu1 %v2186_v30  ;;  %547 = vmatmul.mubr.f32.gmra.mrb[4].mxu0 %v2162_v16 }
  0x40   : > { %452 = vmatprep.mubr.f32.mxu1 %v2046_v2  ;;  %552 = vmatprep.mubr.f32.mxu0 %v2046_v2 }
  0x43   : > { %454 = vmatmul.mubr.f32.gmra.mrb[10].mxu1 %v2207_v39  ;;  %555 = vmatmul.mubr.f32.gmra.mrb[6].mxu0 %v2184_v29 }
  0x44   : > { %560 = vmatprep.mubr.f32.mxu0 %v2046_v2  ;;  %1748 = vmatprep.mubr.f32.mxu1 %v2190_v32 }
  0x47   : > { %563 = vmatmul.mubr.f32.gmra.mrb[8].mxu0 %v2205_v38  ;;  %1749 = vmatmul.mubr.f32.vlgmr.msra.gmra.mrb[12].mxu1 %v2210_v41 }
  0x48   : > { %568 = vmatprep.mubr.f32.mxu0 %v2046_v2  ;;  %1751 = vmatprep.mubr.f32.mxu1 %v303_v50 }
  0x49   : > { %1758 = vmatpush3.msra.mxu1 %v1051_v63 }
  0x4a   : > { %1768 = vmatprep.subr.mxu1 %v1048_v57 }
  0x4b   : > { %571 = vmatmul.mubr.f32.gmra.mrb[10].mxu0 %v2220_v48  ;;  %1752 = vmatmul.mubr.f32.gmra.mrb[14].mxu1 %v314_v54 }
  0x4c   : > { %643 = vmatprep.mubr.f32.mxu0 %v2046_v2  ;;  %1754 = vmatprep.mubr.f32.mxu1 %v325_v58 }
  0x4f   : > { %647 = vmatmul.mubr.f32.vlgmr.msra.gmra.mrb[0].mxu0 %v2159_v15  ;;  %1755 = vmatmul.mubr.f32.gmra.mrb[16].mxu1 %v336_v61 }
  0x50   : > { %705 = vmatpush1.msra.mxu0 %v351_v36  ;;  %652 = vmatprep.mubr.f32.mxu0 %v2046_v2 }
  0x51   : > { %1759 = vmatprep.mubr.f32.mxu1 %v2138_v7  ;;  %812 = vmatprep.subr.mxu0 %v2188_v31 }
  0x53   : > { %656 = vmatmul.mubr.f32.gmra.mrb[2].mxu0 %v2170_v20  ;;  %1760 = vmatmul.mubr.f32.vlgmr.msra.gmra.mrb[12].mxu1 %v2140_v8 }
  0x54   : > { %661 = vmatprep.mubr.f32.mxu0 %v2046_v2  ;;  %1762 = vmatprep.mubr.f32.mxu1 %v2143_v10 }
  0x55   : > { %1769 = vmatpush3.msra.mxu1 %v1048_v57 }
  0x56   : > { %1779 = vmatprep.subr.mxu1 %v2229_v53 }
  0x57   : > { %665 = vmatmul.mubr.f32.gmra.mrb[4].mxu0 %v2181_v28  ;;  %1763 = vmatmul.mubr.f32.gmra.mrb[14].mxu1 %v2164_v17 }
  0x58   : > { %670 = vmatprep.mubr.f32.mxu0 %v2046_v2  ;;  %1765 = vmatprep.mubr.f32.mxu1 %v2186_v30 }
  0x5b   : > { %674 = vmatmul.mubr.f32.gmra.mrb[6].mxu0 %v2202_v37  ;;  %1766 = vmatmul.mubr.f32.gmra.mrb[16].mxu1 %v2207_v39 }
  0x5c   : > { %679 = vmatprep.mubr.f32.mxu0 %v2046_v2  ;;  %1770 = vmatprep.mubr.f32.mxu1 %v2147_v12 }
  0x5f   : > { %683 = vmatmul.mubr.f32.gmra.mrb[8].mxu0 %v2226_v52  ;;  %1771 = vmatmul.mubr.f32.vlgmr.msra.gmra.mrb[12].mxu1 %v2150_v13 }
  0x60   : > { %688 = vmatprep.mubr.f32.mxu0 %v2046_v2  ;;  %1773 = vmatprep.mubr.f32.mxu1 %v2162_v16 }
  0x61   : > { %1780 = vmatpush3.msra.mxu1 %v2229_v53 }
  0x62   : > { %1790 = vmatprep.subr.mxu1 %v2248_v60 }
  0x63   : > { %692 = vmatmul.mubr.f32.gmra.mrb[10].mxu0 %v2235_v56  ;;  %1774 = vmatmul.mubr.f32.gmra.mrb[14].mxu1 %v2184_v29 }
  0x64   : > { %768 = vmatprep.mubr.f32.mxu0 %v2046_v2  ;;  %1776 = vmatprep.mubr.f32.mxu1 %v2205_v38 }
  0x67   : > { %770 = vmatmul.mubr.f32.vlgmr.msra.gmra.mrb[0].mxu0 %v2138_v7  ;;  %1777 = vmatmul.mubr.f32.gmra.mrb[16].mxu1 %v2220_v48 }
  0x68   : > { %814 = vmatpush1.msra.mxu0 %v2176_v25  ;;  %775 = vmatprep.mubr.f32.mxu0 %v2046_v2 }
  0x69   : > { %1781 = vmatprep.mubr.f32.mxu1 %v2159_v15 }
  0x6b   : > { %777 = vmatmul.mubr.f32.gmra.mrb[2].mxu0 %v2140_v8  ;;  %1782 = vmatmul.mubr.f32.vlgmr.msra.gmra.mrb[12].mxu1 %v2170_v20 }
  0x6c   : > { %782 = vmatprep.mubr.f32.mxu0 %v2046_v2  ;;  %1784 = vmatprep.mubr.f32.mxu1 %v2181_v28 }
  0x6d   : > { %1791 = vmatpush3.msra.mxu1 %v2248_v60 }
  0x6e   : > { %1801 = vmatprep.subr.mxu1 %v2229_v53 }
  0x6f   : > { %784 = vmatmul.mubr.f32.gmra.mrb[4].mxu0 %v2143_v10  ;;  %1785 = vmatmul.mubr.f32.gmra.mrb[14].mxu1 %v2202_v37 }
  0x70   : > { %789 = vmatprep.mubr.f32.mxu0 %v2046_v2  ;;  %1787 = vmatprep.mubr.f32.mxu1 %v2226_v52 }
  0x73   : > { %791 = vmatmul.mubr.f32.gmra.mrb[6].mxu0 %v2164_v17  ;;  %1788 = vmatmul.mubr.f32.gmra.mrb[16].mxu1 %v2235_v56 }
  0x74   : > { %796 = vmatprep.mubr.f32.mxu0 %v2046_v2  ;;  %1792 = vmatprep.mubr.f32.mxu1 %v2138_v7 }
  0x77   : > { %798 = vmatmul.mubr.f32.gmra.mrb[8].mxu0 %v2186_v30  ;;  %1793 = vmatmul.mubr.f32.vlgmr.msra.gmra.mrb[12].mxu1 %v2140_v8 }
  0x78   : > { %803 = vmatprep.mubr.f32.mxu0 %v2046_v2  ;;  %1795 = vmatprep.mubr.f32.mxu1 %v2143_v10 }
  0x79   : > { %1802 = vmatpush3.msra.mxu1 %v2229_v53 }
  0x7b   : > { %805 = vmatmul.mubr.f32.gmra.mrb[10].mxu0 %v2207_v39  ;;  %1796 = vmatmul.mubr.f32.gmra.mrb[14].mxu1 %v2164_v17 }
  0x7c   : > { %877 = vmatprep.mubr.f32.mxu0 %v2046_v2  ;;  %1798 = vmatprep.mubr.f32.mxu1 %v2186_v30 }
  0x7f   : > { %879 = vmatmul.mubr.f32.vlgmr.msra.gmra.mrb[0].mxu0 %v2138_v7  ;;  %1799 = vmatmul.mubr.f32.gmra.mrb[16].mxu1 %v2207_v39 }
  0x80   : > { %884 = vmatprep.mubr.f32.mxu0 %v2046_v2  ;;  %1803 = vmatprep.mubr.f32.mxu1 %v2138_v7 }
  0x83   : > { %886 = vmatmul.mubr.f32.gmra.mrb[2].mxu0 %v2140_v8  ;;  %1804 = vmatmul.mubr.f32.vlgmr.msra.gmra.mrb[12].mxu1 %v2140_v8 }
  0x84   : > { %891 = vmatprep.mubr.f32.mxu0 %v2046_v2  ;;  %1806 = vmatprep.mubr.f32.mxu1 %v2143_v10 }
  0x87   : > { %893 = vmatmul.mubr.f32.gmra.mrb[4].mxu0 %v2143_v10  ;;  %1807 = vmatmul.mubr.f32.gmra.mrb[14].mxu1 %v2164_v17 }
  0x88   : > { %898 = vmatprep.mubr.f32.mxu0 %v2046_v2  ;;  %1809 = vmatprep.mubr.f32.mxu1 %v2186_v30 }
  0x8b   : > { %900 = vmatmul.mubr.f32.gmra.mrb[6].mxu0 %v2164_v17  ;;  %1810 = vmatmul.mubr.f32.gmra.mrb[16].mxu1 %v2207_v39 }
  0x8c   : > { %905 = vmatprep.mubr.f32.mxu0 %v2046_v2 }
  0x8f   : > { %907 = vmatmul.mubr.f32.gmra.mrb[8].mxu0 %v2186_v30 }
  0x90   : > { %912 = vmatprep.mubr.f32.mxu0 %v2046_v2 }
  0x93   : > { %914 = vmatmul.mubr.f32.gmra.mrb[10].mxu0 %v2207_v39 }
  0xf6   : > { %v283_v0 = vpop.f32.mrb[0].mxu1 }
  0xf7   : > { %v285_v1 = vpop.f32.mrb[1].mxu1 }
  0xfa   : > { %v294_v3 = vpop.f32.mrb[2].mxu1 }
  0xfb   : > { %v296_v4 = vpop.f32.mrb[3].mxu1 }
  0xfe   : > { %v305_v5 = vpop.f32.mrb[4].mxu1 }
  0xff   : > { %v307_v6 = vpop.f32.mrb[5].mxu1 }
 0x10e   : > { %v441_v7 = vpop.f32.mrb[6].mxu1 }
 0x10f   : > { %v443_v8 = vpop.f32.mrb[7].mxu1 }
 0x112   : > { %v448_v9 = vpop.f32.mrb[8].mxu1 }
 0x113   : > { %v450_v10 = vpop.f32.mrb[9].mxu1 }
 0x116   : > { %v455_v11 = vpop.f32.mrb[10].mxu1 }
 0x117   : > { %v457_v12 = vpop.f32.mrb[11].mxu1 }
 0x152   : > { %v880_v13 = vpop.f32.mrb[0].mxu0 }
 0x153   : > { %v1814_v14 = vadd.f32 %v880_v13, %v283_v0  ;;  %v882_v2 = vpop.f32.mrb[1].mxu0 }
 0x154   : > { %v1815_v15 = vadd.f32 %v882_v2, %v285_v1 }
 0x155   : > { %1581 = vst [vmem:[%s2354_s24] sm:$0xff] %v1814_v14 }
 0x156   : > { %1582 = vst [vmem:[%s2354_s24 + $0x8] sm:$0xff] %v1815_v15  ;;  %v887_v16 = vpop.f32.mrb[2].mxu0  ;;  %v1805_v17 = vpop.f32.mrb[12].mxu1 }
 0x157   : > { %v1816_v18 = vadd.f32 %v887_v16, %v294_v3  ;;  %1587 = vst.msk [vmem:[%s2354_s24 + $0x28] sm:$0xff] %vm1583_vm2, %v1805_v17  ;;  %v889_v19 = vpop.f32.mrb[3].mxu0  ;;  %v1547_v20 = vpop.f32.mrb[13].mxu1 }
 0x158   : > { %v1817_v21 = vadd.f32 %v889_v19, %v296_v4  ;;  %1584 = vst.msk [vmem:[%s2354_s24 + $0x10] sm:$0xff] %vm1583_vm2, %v1547_v20 }
 0x159   : > { %1585 = vst [vmem:[%s2354_s24 + $0x18] sm:$0xff] %v1816_v18 }
 0x15a   : > { %1586 = vst [vmem:[%s2354_s24 + $0x20] sm:$0xff] %v1817_v21  ;;  %v894_v22 = vpop.f32.mrb[4].mxu0  ;;  %v1808_v23 = vpop.f32.mrb[14].mxu1 }
 0x15b   : > { %v1818_v24 = vadd.f32 %v894_v22, %v305_v5  ;;  %1593 = vst.msk [vmem:[%s2354_s24 + $0x58] sm:$0xff] %vm1583_vm2, %v1808_v23  ;;  %v896_v25 = vpop.f32.mrb[5].mxu0  ;;  %v1559_v26 = vpop.f32.mrb[15].mxu1 }
 0x15c   : > { %v1819_v27 = vadd.f32 %v896_v25, %v307_v6  ;;  %1590 = vst.msk [vmem:[%s2354_s24 + $0x40] sm:$0xff] %vm1583_vm2, %v1559_v26 }
 0x15d   : > { %1588 = vst [vmem:[%s2354_s24 + $0x30] sm:$0xff] %v1818_v24 }
 0x15e   : > { %1589 = vst [vmem:[%s2354_s24 + $0x38] sm:$0xff] %v1819_v27  ;;  %v901_v28 = vpop.f32.mrb[6].mxu0  ;;  %v1811_v29 = vpop.f32.mrb[16].mxu1 }
 0x15f   : > { %v1820_v30 = vadd.f32 %v901_v28, %v441_v7  ;;  %1599 = vst.msk [vmem:[%s2354_s24 + $0x88] sm:$0xff] %vm1583_vm2, %v1811_v29  ;;  %v903_v31 = vpop.f32.mrb[7].mxu0  ;;  %v1571_v32 = vpop.f32.mrb[17].mxu1 }
 0x160   : > { %v1821_v33 = vadd.f32 %v903_v31, %v443_v8  ;;  %1596 = vst.msk [vmem:[%s2354_s24 + $0x70] sm:$0xff] %vm1583_vm2, %v1571_v32 }
 0x161   : > { %1591 = vst [vmem:[%s2354_s24 + $0x48] sm:$0xff] %v1820_v30 }
 0x162   : > { %1592 = vst [vmem:[%s2354_s24 + $0x50] sm:$0xff] %v1821_v33  ;;  %v908_v34 = vpop.f32.mrb[8].mxu0 }
 0x163   : > { %v1822_v35 = vadd.f32 %v908_v34, %v448_v9  ;;  %v910_v36 = vpop.f32.mrb[9].mxu0 }
 0x164   : > { %v1823_v37 = vadd.f32 %v910_v36, %v450_v10 }
 0x165   : > { %1594 = vst [vmem:[%s2354_s24 + $0x60] sm:$0xff] %v1822_v35 }
 0x166   : > { %1595 = vst [vmem:[%s2354_s24 + $0x68] sm:$0xff] %v1823_v37  ;;  %v915_v38 = vpop.f32.mrb[10].mxu0 }
 0x167   : > { %v1824_v39 = vadd.f32 %v915_v38, %v455_v11  ;;  %v917_v40 = vpop.f32.mrb[11].mxu0 }
 0x168   : > { %v1825_v41 = vadd.f32 %v917_v40, %v457_v12 }
 0x169   : > { %1597 = vst [vmem:[%s2354_s24 + $0x78] sm:$0xff] %v1824_v39 }
 0x16a   : > { %1598 = vst [vmem:[%s2354_s24 + $0x80] sm:$0xff] %v1825_v41 }
 0x16b   : > { %1979 = shalt.err (!%p1976_p5)
}
 0x16c   : > { %s1980_s6 = scalar_lea.hbm %s2383_s29, 2304  ;;  %s1984_s15 = scalar_lea.hbm %s2439_s2, 4608 }
 0x16d   : > { %p1981_p6 = scmp.ne.s32.totalorder %s2383_s29, %s1980_s6  ;;  %p1985_p10 = scmp.lt.u32.totalorder %s2383_s29, %s2439_s2 }
 0x16e   : > { %p1986_p11 = scmp.lt.u32.totalorder %s1984_s15, %s1980_s6  ;;  %p1988_p13 = scmp.lt.u32.totalorder %s1980_s6, %s2383_s29 }
 0x16f   : > { %p1982_p7 = pnand %p1981_p6, %p2105_p4 }
 0x170   : > { %p1987_p12 = por %p1986_p11, %p1985_p10 }
 0x171   : > { %p1983_p9 = pneg %p1982_p7 }
 0x172   : > { %p1989_p0 = por %p1988_p13, %p1987_p12 }
 0x174   : > { %p1990_p1 = pnand %p1989_p0, %p1983_p9 }
 0x176   : > { %1993 = shalt.err (!%p1990_p1)
}
 0x177   : > { %s2048_s20 = smov 384   ;;  %s2049_s23 = smov 24  }
 0x178   : > { %1907 = dma.vmem_to_hbm [thread:$0]  (%p2105_p4), %s2385_s26, 2304, %s2383_s29, %s2391_s12, %s2048_s20, %s2048_s20, %s2049_s23  }
 0x179 PF: > { %p1913_p2 = scmp.ge.s32.totalorder %s2044_s14, 2  ;;  %s1631_s24 = sand.u32 1, %s2024_s9  }
 0x17a   : > { %s1632_s25 = scalar_lea.sflag [#allocation3], %s1631_s24 }
 0x17b   : > { %p1910_p3 = pnand %p1913_p2, %p2112_p8 }
 0x17d   : > { %2019 = dma.done.wait (!%p1910_p3), %s1632_s25, 2304  }
 0x17e   : > { %2021 = vsyncadd (!%p1910_p3), %s1632_s25, 4294964992  ;;  %s15_s14 = sadd.s32 1, %s2044_s14   ;;  %s2442_s9 = smov %s2028_s10 }
 0x17f   : > { %p12_p5 = scmp.ge.s32.totalorder %s15_s14, 4   ;;  %s2443_s10 = smov %s2032_s11 }
 0x180   : > { %s2444_s11 = smov %s2118_s22  ;;  %s2445_s12 = smov %s2040_s13 }
 0x181   : > { %s2446_s13 = smov %s2448_s17  ;;  %14 = sbr.rel (!%p12_p5) target bundleno = 4 (0x4), region = 63 }
 0x188   :  { %1637 = vsyncpa [#allocation3], 1 }
 0x189   :  { %1639 = vsyncpa [#allocation3 + $0x1], 1 }

</bundles_post_ra>
